<compile_context>
chip_gen: v6e
topology: v6e:2x2x1
jax: 0.10.0
libtpu: 0.0.40
codegen_flags: <defaults>
</compile_context>

<pallas_src>
import functools

import jax
import jax.numpy as jnp
from jax import lax
from jax.experimental import pallas as pl
from jax.experimental.pallas import tpu as pltpu

_NORM_EPS = 1e-24  # on ||x||^2  ->  1e-12 on ||x||, matching F.normalize's eps


def _round_up(n, m):
    return ((n + m - 1) // m) * m


def _l2_normalize(x):
    # x * rsqrt(sum(x^2)) : rsqrt goes to the EUP (free slot), no vector divide.
    return x * lax.rsqrt(jnp.maximum(jnp.sum(x * x, axis=-1, keepdims=True), _NORM_EPS))


def _proj_kernel(x_ref, w_ref, out_ref, *, norm):
    x = x_ref[...].astype(jnp.float32)            # [TB, in_dim]
    if norm:                                      # norm_modality
        x = _l2_normalize(x)
    # bf16-in / f32-accumulate matmul on the MXU.
    y = jnp.dot(x.astype(jnp.bfloat16), w_ref[...],
                preferred_element_type=jnp.float32)   # [TB, out_dim]
    if norm:                                      # norm_projection
        y = _l2_normalize(y)
    out_ref[...] = y.astype(out_ref.dtype)


def projection_layer(x, weight, *, projection=True, norm=True, block_rows=256):
    """Pallas ProjectionLayer.

    Args:
      x:      [..., in_dim] float array.
      weight: [out_dim, in_dim] (torch nn.Linear layout, bias=False).
      projection, norm: the module's constructor flags (static).
      block_rows: row tile for the batch grid (>=128 recommended on v5e).
    """
    if not projection:
        # norm_modality = projection * norm == False -> forward is the identity.
        return x

    *lead, in_dim = x.shape
    out_dim = weight.shape[0]

    # Weight: transpose to [in_dim, out_dim] and keep it bf16 in HBM.
    w = jnp.asarray(weight, jnp.float32).T.astype(jnp.bfloat16)

    x2 = x.reshape(-1, in_dim)
    b = x2.shape[0]

    # Row tile: multiple of 8, capped at block_rows; pad batch so it divides evenly.
    tb = min(block_rows, _round_up(b, 8))
    b_pad = _round_up(b, tb)
    if b_pad != b:
        x2 = jnp.pad(x2, ((0, b_pad - b), (0, 0)))

    kernel = functools.partial(_proj_kernel, norm=norm)
    out = pl.pallas_call(
        kernel,
        out_shape=jax.ShapeDtypeStruct((b_pad, out_dim), x.dtype),
        grid=(b_pad // tb,),
        in_specs=[
            pl.BlockSpec((tb, in_dim), lambda i: (i, 0)),       # activations: pipelined
            pl.BlockSpec((in_dim, out_dim), lambda i: (0, 0)),  # weight: resident in VMEM
        ],
        out_specs=pl.BlockSpec((tb, out_dim), lambda i: (i, 0)),
        compiler_params=pltpu.CompilerParams(
            dimension_semantics=("parallel",),      # 2 TCs on v7x
            vmem_limit_bytes=64 * 1024 * 1024,
        ),
    )(x2, w)

    out = out[:b]
    return out.reshape(*lead, out_dim)


if __name__ == "__main__":
    key = jax.random.PRNGKey(0)
    kx, kw = jax.random.split(key)

    # Small but layout-friendly shapes (real model: in_dim=768/1024, out_dim=512).
    B, IN_DIM, PROJ_DIM = 10, 256, 128
    x = jax.random.normal(kx, (B, IN_DIM), dtype=jnp.float32)
    w = jax.random.normal(kw, (PROJ_DIM, IN_DIM), dtype=jnp.float32) * 0.02  # torch layout

    # Full path: normalize -> Linear -> normalize.
    out = projection_layer(x, w, projection=True, norm=True)
    jax.block_until_ready(out)

    # Pure-JAX f32 reference.
    xn = x / jnp.linalg.norm(x, axis=-1, keepdims=True)
    y = xn @ w.T
    ref = y / jnp.linalg.norm(y, axis=-1, keepdims=True)

    assert out.shape == (B, PROJ_DIM)
    assert bool(jnp.isfinite(out).all())
    assert bool(jnp.allclose(jnp.linalg.norm(out, axis=-1), 1.0, atol=1e-3))
    assert bool(jnp.allclose(out, ref, atol=3e-2, rtol=3e-2))

    # projection=True, norm=False -> plain linear.
    out_nonorm = projection_layer(x, w, projection=True, norm=False)
    jax.block_until_ready(out_nonorm)
    assert bool(jnp.allclose(out_nonorm, x @ w.T, atol=3e-2, rtol=3e-2))

    # projection=False -> identity.
    assert bool(jnp.allclose(projection_layer(x, w, projection=False), x))

    print("KERNEL_OK")
</pallas_src>

<mosaic_0001>
module attributes {stable_mosaic.version = 11 : i64} {
  func.func @_proj_kernel(%arg0: i32, %arg1: memref<16x256xf32, #tpu.memory_space<vmem>>, %arg2: memref<256x128xbf16, #tpu.memory_space<vmem>>, %arg3: memref<16x128xf32, #tpu.memory_space<vmem>>) attributes {dimension_semantics = [#tpu.dimension_semantics<parallel>], iteration_bounds = array<i64: 1>, scalar_prefetch = 0 : i64, scratch_operands = 0 : i64, tpu.core_type = #tpu.core_type<tc>, window_params = [{transform_indices = @transform_0, window_bounds = array<i64: 16, 256>}, {pipeline_mode = #tpu.pipeline_mode<synchronous>, transform_indices = @transform_1, window_bounds = array<i64: 256, 128>}, {transform_indices = @transform_2, window_bounds = array<i64: 16, 128>}]} {
    %c0 = arith.constant 0 : index
    %c0_0 = arith.constant 0 : index
    %0 = vector.load %arg1[%c0, %c0_0] : memref<16x256xf32, #tpu.memory_space<vmem>>, vector<16x256xf32>
    %1 = arith.mulf %0, %0 : vector<16x256xf32>
    %cst = arith.constant dense<0.000000e+00> : vector<16xf32>
    %2 = vector.multi_reduction <add>, %1, %cst [1] : vector<16x256xf32> to vector<16xf32>
    %3 = vector.shape_cast %2 : vector<16xf32> to vector<16x1xf32>
    %cst_1 = arith.constant 1.000000e-24 : f32
    %4 = vector.broadcast %cst_1 : f32 to vector<16x1xf32>
    %5 = arith.maximumf %3, %4 : vector<16x1xf32>
    %6 = math.rsqrt %5 : vector<16x1xf32>
    %7 = vector.broadcast %6 : vector<16x1xf32> to vector<16x256xf32>
    %8 = arith.mulf %0, %7 : vector<16x256xf32>
    %9 = arith.truncf %8 : vector<16x256xf32> to vector<16x256xbf16>
    %c0_2 = arith.constant 0 : index
    %c0_3 = arith.constant 0 : index
    %10 = vector.load %arg2[%c0_2, %c0_3] : memref<256x128xbf16, #tpu.memory_space<vmem>>, vector<256x128xbf16>
    %cst_4 = arith.constant dense<0.000000e+00> : vector<16x128xf32>
    %11 = tpu.matmul %9, %10, %cst_4 {dimension_numbers = #tpu.dot_dimension_numbers<[1], [0], [0], [1], [0, 0, 1, 1], [], []>} : vector<16x256xbf16>, vector<256x128xbf16>, vector<16x128xf32> -> vector<16x128xf32>
    %12 = arith.mulf %11, %11 : vector<16x128xf32>
    %cst_5 = arith.constant dense<0.000000e+00> : vector<16xf32>
    %13 = vector.multi_reduction <add>, %12, %cst_5 [1] : vector<16x128xf32> to vector<16xf32>
    %14 = vector.shape_cast %13 : vector<16xf32> to vector<16x1xf32>
    %cst_6 = arith.constant 1.000000e-24 : f32
    %15 = vector.broadcast %cst_6 : f32 to vector<16x1xf32>
    %16 = arith.maximumf %14, %15 : vector<16x1xf32>
    %17 = math.rsqrt %16 : vector<16x1xf32>
    %18 = vector.broadcast %17 : vector<16x1xf32> to vector<16x128xf32>
    %19 = arith.mulf %11, %18 : vector<16x128xf32>
    %c0_7 = arith.constant 0 : index
    %c0_8 = arith.constant 0 : index
    %20 = vector.load %arg3[%c0_7, %c0_8] : memref<16x128xf32, #tpu.memory_space<vmem>>, vector<16x128xf32>
    tpu.vector_store %arg3[%c0_7, %c0_8], %19 {strides = array<i32>} : memref<16x128xf32, #tpu.memory_space<vmem>>, vector<16x128xf32>,
    return
  }
  func.func @transform_0(%arg0: i32) -> (i32, i32) {
    %c0_i32 = arith.constant 0 : i32
    %c0_i32_0 = arith.constant 0 : i32
    return %arg0, %c0_i32 : i32, i32
  }
  func.func @transform_1(%arg0: i32) -> (i32, i32) {
    %c0_i32 = arith.constant 0 : i32
    %c0_i32_0 = arith.constant 0 : i32
    %c0_i32_1 = arith.constant 0 : i32
    return %c0_i32, %c0_i32_0 : i32, i32
  }
  func.func @transform_2(%arg0: i32) -> (i32, i32) {
    %c0_i32 = arith.constant 0 : i32
    %c0_i32_0 = arith.constant 0 : i32
    return %arg0, %c0_i32 : i32, i32
  }
}

</mosaic_0001>

<bundles_post_ra>
// kernel: tpu_custom_call.1
= control target key start
LH: loop header
LB: loop body
LE: loop exit
PB: predicated region body
PF: predicated region fallthrough
CT: control target
= control target key end

     0   :  { %7 = vsyncpa [#allocation3], 0  ;;  %s436_s0 = inlined_call_operand.hbm [shape: f32[16,256], index: 0, kind: input, shape index: {}]   ;;  %s437_s1 = inlined_call_operand.hbm [shape: bf16[256,128], index: 1, kind: input, shape index: {}]   ;;  %s438_s2 = inlined_call_operand.hbm [shape: f32[16,128], index: 2, kind: output, shape index: {}]  }
   0x1   :  { %8 = vsyncpa [#allocation6], 0 }
   0x2   :  { %9 = vsyncpa [#allocation4], 0  ;;  %s403_s9 = smov [#allocation2]  }
   0x3   :  { %s15_s10 = sshll.u32 %s403_s9, 4  ;;  %s16_s10 = int_to_ptr.vmem [resolvable:$true] %s15_s10 }
   0x4   :  { %s345_s11 = scalar_lea.vmem %s16_s10, 512  ;;  %p350_p1 = scmp.lt.s32.totalorder %s16_s10, %s16_s10 }
   0x5   :  { %p346_p0 = scmp.ne.s32.totalorder %s16_s10, %s345_s11  ;;  %p351_p2 = scmp.lt.s32.totalorder %s345_s11, %s345_s11 }
   0x7   :  { %p352_p3 = por %p351_p2, %p350_p1 }
   0x9   :  { %p353_p4 = pnand %p352_p3, %p346_p0 }
   0xb   :  { %356 = shalt.err (!%p353_p4)
}
   0xc   :  { %s404_s12 = smov 256   ;;  %s405_s13 = smov 16  }
   0xd   :  { %21 = dma.hbm_to_vmem [thread:$0]  %s436_s0, 512, %s16_s10, [#allocation3], %s404_s12, %s404_s12, %s405_s13  }
   0xe   :  { %s406_s16 = smov [#allocation5]  }
   0xf   :  { %s27_s17 = sshll.u32 %s406_s16, 4  ;;  %s28_s17 = int_to_ptr.vmem [resolvable:$true] %s27_s17 }
  0x10   :  { %s365_s18 = scalar_lea.vmem %s28_s17, 2048  ;;  %p370_p6 = scmp.lt.s32.totalorder %s28_s17, %s28_s17 }
  0x11   :  { %p366_p5 = scmp.ne.s32.totalorder %s28_s17, %s365_s18  ;;  %p371_p7 = scmp.lt.s32.totalorder %s365_s18, %s365_s18 }
  0x13   :  { %p372_p8 = por %p371_p7, %p370_p6 }
  0x15   :  { %p373_p9 = pnand %p372_p8, %p366_p5 }
  0x17   :  { %376 = shalt.err (!%p373_p9)
}
  0x18   :  { %s407_s19 = smov 64   ;;  %s408_s20 = smov 4  }
  0x19   :  { %33 = dma.hbm_to_vmem [thread:$0]  %s437_s1, 2048, %s28_s17, [#allocation6], %s407_s19, %s407_s19, %s408_s20  }
  0x1a   :  { %397 = dma.done.wait [#allocation3], 512  }
  0x1b   :  { %398 = vsyncadd [#allocation3], 4294966784 }
  0x1c   :  { %399 = dma.done.wait [#allocation6], 2048  }
  0x1d   :  { %400 = vsyncadd [#allocation6], 4294965248  ;;  %v41_v0 = vld [vmem:[#allocation2] sm:$0xff]  ;;  %v42_v1 = vld [vmem:[#allocation2 + $0x8] sm:$0xff]  ;;  %s409_s0 = smov [#allocation7]  }
  0x1e   :  { %v43_v2 = vld [vmem:[#allocation2 + $0x10] sm:$0xff]  ;;  %v45_v3 = vmul.f32 %v41_v0, %v41_v0  ;;  %v46_v4 = vmul.f32 %v42_v1, %v42_v1  ;;  %v44_v5 = vld [vmem:[#allocation2 + $0x18] sm:$0xff]  ;;  %v317_v14 = vld [vmem:[#allocation5 + $0x68] sm:$0xff]   ;;  %s253_s1 = sshll.u32 %s409_s0, 4  ;;  %s254_s1 = int_to_ptr.vmem [resolvable:$true] %s253_s1 }
  0x1f   :  { %v47_v6 = vmul.f32 %v43_v2, %v43_v2  ;;  %v48_v7 = vmul.f32 %v44_v5, %v44_v5  ;;  %v313_v8 = vld [vmem:[#allocation5 + $0x78] sm:$0xff]   ;;  %v315_v11 = vld [vmem:[#allocation5 + $0x70] sm:$0xff]   ;;  %v318_v15 = vld [vmem:[#allocation5 + $0x28] sm:$0xff]   ;;  %s377_s23 = scalar_lea.vmem %s254_s1, 256  ;;  %p382_p11 = scmp.lt.s32.totalorder %s254_s1, %s254_s1 }
  0x20   :  { %v49_v9 = vadd.f32 %v46_v4, %v45_v3  ;;  %v314_v10 = vld [vmem:[#allocation5 + $0x38] sm:$0xff]   ;;  %282 = vmatprep.subr.bf16.mxu0 %v313_v8  ;;  %v316_v13 = vld [vmem:[#allocation5 + $0x30] sm:$0xff]   ;;  %v319_v16 = vld [vmem:[#allocation5 + $0x60] sm:$0xff]   ;;  %p378_p10 = scmp.ne.s32.totalorder %s254_s1, %s377_s23  ;;  %p383_p12 = scmp.lt.s32.totalorder %s377_s23, %s377_s23 }
  0x21   :  { %v52_v12 = vadd.f32 %v48_v7, %v47_v6  ;;  %283 = vmatpush3.bf16.msra.mxu0 %v314_v10  ;;  %v320_v17 = vld [vmem:[#allocation5 + $0x20] sm:$0xff]   ;;  %v321_v18 = vld [vmem:[#allocation5 + $0x58] sm:$0xff]   ;;  %v323_v20 = vld [vmem:[#allocation5 + $0x50] sm:$0xff]  }
  0x22   :  { %50 = vadd.xlane.f32.xlu0 %v49_v9  ;;  %284 = vmatprep.subr.bf16.mxu0 %v315_v11  ;;  %v322_v19 = vld [vmem:[#allocation5 + $0x18] sm:$0xff]   ;;  %v324_v21 = vld [vmem:[#allocation5 + $0x10] sm:$0xff]   ;;  %v325_v22 = vld [vmem:[#allocation5 + $0x48] sm:$0xff]   ;;  %p384_p13 = por %p383_p12, %p382_p11 }
  0x23   :  { %v326_v23 = vld [vmem:[#allocation5 + $0x8] sm:$0xff]   ;;  %v327_v24 = vld [vmem:[#allocation5 + $0x40] sm:$0xff]  }
  0x24   :  { %v328_v25 = vld [vmem:[#allocation5] sm:$0xff]   ;;  %p385_p0 = pnand %p384_p13, %p378_p10 }
  0x25   :  { %285 = vmatpush3.bf16.msra.mxu0 %v316_v13 }
  0x26   :  { %53 = vadd.xlane.f32.xlu0 %v52_v12  ;;  %286 = vmatprep.subr.bf16.mxu0 %v317_v14 }
  0x29   :  { %287 = vmatpush3.bf16.msra.mxu0 %v318_v15 }
  0x2a   :  { %288 = vmatprep.subr.bf16.mxu0 %v319_v16 }
  0x2d   :  { %289 = vmatpush3.bf16.msra.mxu0 %v320_v17 }
  0x2e   :  { %290 = vmatprep.subr.bf16.mxu0 %v321_v18 }
  0x31   :  { %291 = vmatpush3.bf16.msra.mxu0 %v322_v19 }
  0x32   :  { %292 = vmatprep.subr.bf16.mxu0 %v323_v20 }
  0x35   :  { %293 = vmatpush3.bf16.msra.mxu0 %v324_v21 }
  0x36   :  { %294 = vmatprep.subr.bf16.mxu0 %v325_v22 }
  0x39   :  { %295 = vmatpush3.bf16.msra.mxu0 %v326_v23 }
  0x3a   :  { %296 = vmatprep.subr.bf16.mxu0 %v327_v24 }
  0x3d   :  { %297 = vmatpush3.bf16.msra.mxu0 %v328_v25 }
  0xab   :  { %v51_v26 = vpop.xlane.xlu0 %50 }
  0xac   :  { %v55_v27 = vmax.f32 %v51_v26, 1e-24 }
  0xae   :  { %329 = vrsqrt.f32 %v55_v27 }
  0xaf   :  { %v54_v28 = vpop.xlane.xlu0 %53 }
  0xb0   :  { %v56_v29 = vmax.f32 %v54_v28, 1e-24 }
  0xb2   :  { %331 = vrsqrt.f32 %v56_v29 }
  0xbb   :  { %v330_v30 = vpop.eup %329 }
  0xbc   :  { %v60_v32 = vmul.f32 %v330_v30, %v42_v1  ;;  %v59_v34 = vmul.f32 %v330_v30, %v41_v0 }
  0xbf   :  { %v332_v31 = vpop.eup %331 }
  0xc0   :  { %v62_v33 = vmul.f32 %v332_v31, %v44_v5  ;;  %v61_v35 = vmul.f32 %v332_v31, %v43_v2 }
  0xc2   :  { %v64_v36 = vpack.c.bf16 %v62_v33, %v60_v32  ;;  %v63_v37 = vpack.c.bf16 %v61_v35, %v59_v34 }
  0xc4   :  { %225 = vmatprep.mubr.bf16.mxu0 %v64_v36 }
  0xc5   :  { %226 = vmatmul.mubr.bf16.vlgmr.msra.gmra.mxu0 %v63_v37 }
 0x185   :  { %v298_v38 = vpop.f32.mrf.mxu0 }
 0x187   :  { %v299_v39 = vpop.f32.mrf.mxu0 }
 0x188   :  { %v300_v40 = vadd.f32 %v299_v39, %v298_v38 }
 0x189   :  { %v301_v41 = vpop.f32.mrf.mxu0 }
 0x18a   :  { %v234_v42 = vmul.f32 %v300_v40, %v300_v40 }
 0x18b   :  { %v302_v43 = vpop.f32.mrf.mxu0 }
 0x18c   :  { %v303_v44 = vadd.f32 %v302_v43, %v301_v41  ;;  %236 = vadd.xlane.f32.xlu1 %v234_v42 }
 0x18e   :  { %v235_v45 = vmul.f32 %v303_v44, %v303_v44 }
 0x190   :  { %238 = vadd.xlane.f32.xlu1 %v235_v45 }
 0x215   :  { %v237_v46 = vpop.xlane.xlu1 %236 }
 0x216   :  { %v240_v47 = vmax.f32 %v237_v46, 1e-24 }
 0x218   :  { %333 = vrsqrt.f32 %v240_v47 }
 0x219   :  { %v239_v48 = vpop.xlane.xlu1 %238 }
 0x21a   :  { %v241_v49 = vmax.f32 %v239_v48, 1e-24 }
 0x21c   :  { %335 = vrsqrt.f32 %v241_v49 }
 0x225   :  { %v334_v50 = vpop.eup %333 }
 0x226   :  { %v244_v51 = vmul.f32 %v334_v50, %v300_v40 }
 0x228   :  { %246 = vst [vmem:[#allocation7] sm:$0xff] %v244_v51 }
 0x229   :  { %v336_v52 = vpop.eup %335 }
 0x22a   :  { %v245_v53 = vmul.f32 %v336_v52, %v303_v44 }
 0x22c   :  { %247 = vst [vmem:[#allocation7 + $0x8] sm:$0xff] %v245_v53 }
 0x22d   :  { %388 = shalt.err (!%p385_p0)
}
 0x22e   :  { %s410_s24 = smov 128   ;;  %s411_s25 = smov 8  }
 0x22f   :  { %259 = dma.vmem_to_hbm [thread:$0]  %s254_s1, 256, %s438_s2, [#allocation4], %s410_s24, %s410_s24, %s411_s25  }
 0x230   :  { %401 = dma.done.wait [#allocation4], 256  }
 0x231   :  { %402 = vsyncadd [#allocation4], 4294967040 }
 0x232   :  { %263 = vsyncpa [#allocation3], 1 }
 0x233   :  { %264 = vsyncpa [#allocation6], 1 }
 0x234   :  { %265 = vsyncpa [#allocation4], 1 }

</bundles_post_ra>
